<compile_context>
chip_gen: v6e
topology: v6e:2x2x1
jax: 0.10.0
libtpu: 0.0.40
codegen_flags: <defaults>
</compile_context>

<pallas_src>
import functools

import jax
import jax.numpy as jnp
from jax.experimental import pallas as pl
from jax.experimental.pallas import tpu as pltpu

WEIGHTS_INITIALIZATION_STD = 0.5


def ensemble_kernel(x_ref, w1_ref, b1_ref, w2_ref, b2_ref, out_ref, *,
                    ensemble_size, output_dim):
    E, O = ensemble_size, output_dim
    x = x_ref[...]                                             # (B, D_in)

    # Layer 1 for all members at once: (B, D_in) @ (D_in, E*H) on the MXU.
    h = jnp.dot(x, w1_ref[...], preferred_element_type=jnp.float32) + b1_ref[...]
    h = jnp.maximum(h, 0.0)                                    # ReLU, (B, E*H)

    # Layer 2, block-diagonal over members, merged mean/variance head:
    # (B, E*H) @ (E*H, 2*E*O) -> (B, 2*E*O); cols [0:E*O] = means, rest raw vars.
    y = jnp.dot(h, w2_ref[...], preferred_element_type=jnp.float32) + b2_ref[...]

    means = y[:, :E * O]                                       # (B, E*O)
    raw_v = y[:, E * O:]                                       # (B, E*O)

    # torch.nn.Softplus() default (beta=1, threshold=20): linear above threshold.
    var = jnp.where(raw_v > 20.0, raw_v, jnp.log1p(jnp.exp(raw_v))) + 1e-6
    msq = var + means * means                                  # var_e + mean_e^2

    B = x.shape[0]
    sum_mean = jnp.zeros((B, O), jnp.float32)
    sum_msq = jnp.zeros((B, O), jnp.float32)
    for e in range(E):                 # static unroll (E known at trace time)
        sum_mean = sum_mean + means[:, e * O:(e + 1) * O]
        sum_msq = sum_msq + msq[:, e * O:(e + 1) * O]

    inv = 1.0 / E
    m = sum_mean * inv
    # NOTE: E[var+mean^2] - mean^2 matches the PyTorch reference; it can be
    # slightly negative in f32 under cancellation (same as the reference).
    v = sum_msq * inv - m * m

    out_ref[...] = jnp.concatenate([m, v], axis=-1)            # (B, 2*O), single store


def ensemble_gaussian_mlp(x, w1, b1, w2, b2):
    """Forward pass. w1: (E, D_in, H), b1: (E, H), w2: (E, H, 2*O), b2: (E, 2*O)."""
    E, d_in, H = w1.shape
    O = w2.shape[-1] // 2
    B = x.shape[0]

    # ---- weight packing (layout glue, outside the kernel) ----
    # Layer 1: member e occupies lane columns [e*H, (e+1)*H).
    w1p = jnp.transpose(w1, (1, 0, 2)).reshape(d_in, E * H)
    b1p = b1.reshape(1, E * H)

    # Layer 2: block-diagonal; mean columns first, then raw-variance columns,
    # each half member-major so per-member slices are contiguous.
    w2m, w2v = w2[:, :, :O], w2[:, :, O:]
    w2_bd = jnp.zeros((E * H, 2 * E * O), jnp.float32)
    for e in range(E):
        w2_bd = w2_bd.at[e * H:(e + 1) * H, e * O:(e + 1) * O].set(w2m[e])
        w2_bd = w2_bd.at[e * H:(e + 1) * H, E * O + e * O:E * O + (e + 1) * O].set(w2v[e])
    b2_bd = jnp.concatenate([b2[:, :O].reshape(1, E * O),
                             b2[:, O:].reshape(1, E * O)], axis=-1)

    kernel = functools.partial(ensemble_kernel, ensemble_size=E, output_dim=O)

    grid_spec = pltpu.PrefetchScalarGridSpec(
        num_scalar_prefetch=0,
        grid=(1,),
        in_specs=[
            pl.BlockSpec((B, d_in), lambda i: (0, 0)),
            pl.BlockSpec((d_in, E * H), lambda i: (0, 0)),
            pl.BlockSpec((1, E * H), lambda i: (0, 0)),
            pl.BlockSpec((E * H, 2 * E * O), lambda i: (0, 0)),
            pl.BlockSpec((1, 2 * E * O), lambda i: (0, 0)),
        ],
        out_specs=pl.BlockSpec((B, 2 * O), lambda i: (0, 0)),
    )

    packed = pl.pallas_call(
        kernel,
        out_shape=jax.ShapeDtypeStruct((B, 2 * O), jnp.float32),
        grid_spec=grid_spec,
        compiler_params=pltpu.CompilerParams(
            dimension_semantics=("arbitrary",)),
    )(x, w1p, b1p, w2_bd, b2_bd)

    # TODO(synk): for production shapes add a "parallel" batch-tile grid axis
    # (uses both v7x TensorCores) and cast inputs/weights to bf16 on v6e/v7x.
    return packed[:, :O], packed[:, O:]


def init_params(key, ensemble_size, input_dim, output_dim, hidden_units):
    """Synthetic init matching GaussianMLP.__init__:
    weights ~ Normal(0, 0.5); biases keep PyTorch default U(-1/sqrt(fan_in), +)."""
    keys = jax.random.split(key, 4)
    E, d, h, o2 = ensemble_size, input_dim, hidden_units, 2 * output_dim
    w1 = WEIGHTS_INITIALIZATION_STD * jax.random.normal(keys[0], (E, d, h), jnp.float32)
    w2 = WEIGHTS_INITIALIZATION_STD * jax.random.normal(keys[1], (E, h, o2), jnp.float32)
    b1 = jax.random.uniform(keys[2], (E, h), jnp.float32,
                            minval=-1.0 / jnp.sqrt(d), maxval=1.0 / jnp.sqrt(d))
    b2 = jax.random.uniform(keys[3], (E, o2), jnp.float32,
                            minval=-1.0 / jnp.sqrt(h), maxval=1.0 / jnp.sqrt(h))
    return w1, b1, w2, b2


def reference(x, w1, b1, w2, b2, output_dim):
    """Pure-JAX reference reproducing EnsembleGaussianMLP.forward."""
    means, variances = [], []
    for e in range(w1.shape[0]):
        h = jnp.maximum(x @ w1[e] + b1[e], 0.0)
        y = h @ w2[e] + b2[e]
        m = y[:, :output_dim]
        v = jax.nn.softplus(y[:, output_dim:]) + 1e-6
        means.append(m)
        variances.append(v)
    means = jnp.stack(means)
    variances = jnp.stack(variances)
    mean = means.mean(axis=0)
    variance = (variances + means ** 2).mean(axis=0) - mean ** 2
    return mean, variance


if __name__ == "__main__":
    # Small shapes consistent with the module's forward: x is (batch, input_dim).
    batch, input_dim, output_dim, hidden_units, ensemble_size = 8, 16, 4, 32, 5

    key = jax.random.PRNGKey(0)
    k_x, k_p = jax.random.split(key)
    x = jax.random.normal(k_x, (batch, input_dim), jnp.float32)
    w1, b1, w2, b2 = init_params(k_p, ensemble_size, input_dim, output_dim, hidden_units)

    mean, variance = ensemble_gaussian_mlp(x, w1, b1, w2, b2)
    jax.block_until_ready((mean, variance))

    ref_mean, ref_var = reference(x, w1, b1, w2, b2, output_dim)
    assert mean.shape == (batch, output_dim) and variance.shape == (batch, output_dim)
    assert jnp.allclose(mean, ref_mean, atol=1e-4, rtol=1e-4)
    assert jnp.allclose(variance, ref_var, atol=1e-4, rtol=1e-4)

    print("KERNEL_OK")
</pallas_src>

<mosaic_0001>
module attributes {stable_mosaic.version = 11 : i64} {
  func.func @ensemble_kernel(%arg0: i32, %arg1: memref<8x16xf32, #tpu.memory_space<vmem>>, %arg2: memref<16x160xf32, #tpu.memory_space<vmem>>, %arg3: memref<1x160xf32, #tpu.memory_space<vmem>>, %arg4: memref<160x40xf32, #tpu.memory_space<vmem>>, %arg5: memref<1x40xf32, #tpu.memory_space<vmem>>, %arg6: memref<8x8xf32, #tpu.memory_space<vmem>>) attributes {dimension_semantics = [#tpu.dimension_semantics<arbitrary>], iteration_bounds = array<i64: 1>, scalar_prefetch = 0 : i64, scratch_operands = 0 : i64, tpu.core_type = #tpu.core_type<tc>, window_params = [{pipeline_mode = #tpu.pipeline_mode<synchronous>, transform_indices = @transform_0, window_bounds = array<i64: 8, 16>}, {pipeline_mode = #tpu.pipeline_mode<synchronous>, transform_indices = @transform_1, window_bounds = array<i64: 16, 160>}, {pipeline_mode = #tpu.pipeline_mode<synchronous>, transform_indices = @transform_2, window_bounds = array<i64: 1, 160>}, {pipeline_mode = #tpu.pipeline_mode<synchronous>, transform_indices = @transform_3, window_bounds = array<i64: 160, 40>}, {pipeline_mode = #tpu.pipeline_mode<synchronous>, transform_indices = @transform_4, window_bounds = array<i64: 1, 40>}, {pipeline_mode = #tpu.pipeline_mode<synchronous>, transform_indices = @transform_5, window_bounds = array<i64: 8, 8>}]} {
    %c0 = arith.constant 0 : index
    %c0_0 = arith.constant 0 : index
    %0 = vector.load %arg1[%c0, %c0_0] : memref<8x16xf32, #tpu.memory_space<vmem>>, vector<8x16xf32>
    %c0_1 = arith.constant 0 : index
    %c0_2 = arith.constant 0 : index
    %1 = vector.load %arg2[%c0_1, %c0_2] : memref<16x160xf32, #tpu.memory_space<vmem>>, vector<16x160xf32>
    %cst = arith.constant dense<0.000000e+00> : vector<8x160xf32>
    %2 = tpu.matmul %0, %1, %cst {dimension_numbers = #tpu.dot_dimension_numbers<[1], [0], [0], [1], [0, 0, 1, 1], [], []>} : vector<8x16xf32>, vector<16x160xf32>, vector<8x160xf32> -> vector<8x160xf32>
    %c0_3 = arith.constant 0 : index
    %c0_4 = arith.constant 0 : index
    %3 = vector.load %arg3[%c0_3, %c0_4] : memref<1x160xf32, #tpu.memory_space<vmem>>, vector<1x160xf32>
    %4 = vector.broadcast %3 : vector<1x160xf32> to vector<8x160xf32>
    %5 = arith.addf %2, %4 : vector<8x160xf32>
    %cst_5 = arith.constant 0.000000e+00 : f32
    %6 = vector.broadcast %cst_5 : f32 to vector<8x160xf32>
    %7 = arith.maximumf %5, %6 : vector<8x160xf32>
    %c0_6 = arith.constant 0 : index
    %c0_7 = arith.constant 0 : index
    %8 = vector.load %arg4[%c0_6, %c0_7] : memref<160x40xf32, #tpu.memory_space<vmem>>, vector<160x40xf32>
    %cst_8 = arith.constant dense<0.000000e+00> : vector<8x40xf32>
    %9 = tpu.matmul %7, %8, %cst_8 {dimension_numbers = #tpu.dot_dimension_numbers<[1], [0], [0], [1], [0, 0, 1, 1], [], []>} : vector<8x160xf32>, vector<160x40xf32>, vector<8x40xf32> -> vector<8x40xf32>
    %c0_9 = arith.constant 0 : index
    %c0_10 = arith.constant 0 : index
    %10 = vector.load %arg5[%c0_9, %c0_10] : memref<1x40xf32, #tpu.memory_space<vmem>>, vector<1x40xf32>
    %11 = vector.broadcast %10 : vector<1x40xf32> to vector<8x40xf32>
    %12 = arith.addf %9, %11 : vector<8x40xf32>
    %13 = vector.extract_strided_slice %12 {offsets = [0, 0], sizes = [8, 20], strides = [1, 1]} : vector<8x40xf32> to vector<8x20xf32>
    %14 = vector.extract_strided_slice %12 {offsets = [0, 20], sizes = [8, 20], strides = [1, 1]} : vector<8x40xf32> to vector<8x20xf32>
    %cst_11 = arith.constant 2.000000e+01 : f32
    %15 = vector.broadcast %cst_11 : f32 to vector<8x20xf32>
    %16 = arith.cmpf ogt, %14, %15 : vector<8x20xf32>
    %17 = math.exp %14 : vector<8x20xf32>
    %18 = math.log1p %17 : vector<8x20xf32>
    %19 = arith.select %16, %14, %18 : vector<8x20xi1>, vector<8x20xf32>
    %cst_12 = arith.constant 9.99999997E-7 : f32
    %20 = vector.broadcast %cst_12 : f32 to vector<8x20xf32>
    %21 = arith.addf %19, %20 : vector<8x20xf32>
    %22 = arith.mulf %13, %13 : vector<8x20xf32>
    %23 = arith.addf %21, %22 : vector<8x20xf32>
    %cst_13 = arith.constant 0.000000e+00 : f32
    %24 = vector.broadcast %cst_13 : f32 to vector<8x4xf32>
    %cst_14 = arith.constant 0.000000e+00 : f32
    %25 = vector.broadcast %cst_14 : f32 to vector<8x4xf32>
    %26 = vector.extract_strided_slice %13 {offsets = [0, 0], sizes = [8, 4], strides = [1, 1]} : vector<8x20xf32> to vector<8x4xf32>
    %27 = arith.addf %24, %26 : vector<8x4xf32>
    %28 = vector.extract_strided_slice %23 {offsets = [0, 0], sizes = [8, 4], strides = [1, 1]} : vector<8x20xf32> to vector<8x4xf32>
    %29 = arith.addf %25, %28 : vector<8x4xf32>
    %30 = vector.extract_strided_slice %13 {offsets = [0, 4], sizes = [8, 4], strides = [1, 1]} : vector<8x20xf32> to vector<8x4xf32>
    %31 = arith.addf %27, %30 : vector<8x4xf32>
    %32 = vector.extract_strided_slice %23 {offsets = [0, 4], sizes = [8, 4], strides = [1, 1]} : vector<8x20xf32> to vector<8x4xf32>
    %33 = arith.addf %29, %32 : vector<8x4xf32>
    %34 = vector.extract_strided_slice %13 {offsets = [0, 8], sizes = [8, 4], strides = [1, 1]} : vector<8x20xf32> to vector<8x4xf32>
    %35 = arith.addf %31, %34 : vector<8x4xf32>
    %36 = vector.extract_strided_slice %23 {offsets = [0, 8], sizes = [8, 4], strides = [1, 1]} : vector<8x20xf32> to vector<8x4xf32>
    %37 = arith.addf %33, %36 : vector<8x4xf32>
    %38 = vector.extract_strided_slice %13 {offsets = [0, 12], sizes = [8, 4], strides = [1, 1]} : vector<8x20xf32> to vector<8x4xf32>
    %39 = arith.addf %35, %38 : vector<8x4xf32>
    %40 = vector.extract_strided_slice %23 {offsets = [0, 12], sizes = [8, 4], strides = [1, 1]} : vector<8x20xf32> to vector<8x4xf32>
    %41 = arith.addf %37, %40 : vector<8x4xf32>
    %42 = vector.extract_strided_slice %13 {offsets = [0, 16], sizes = [8, 4], strides = [1, 1]} : vector<8x20xf32> to vector<8x4xf32>
    %43 = arith.addf %39, %42 : vector<8x4xf32>
    %44 = vector.extract_strided_slice %23 {offsets = [0, 16], sizes = [8, 4], strides = [1, 1]} : vector<8x20xf32> to vector<8x4xf32>
    %45 = arith.addf %41, %44 : vector<8x4xf32>
    %cst_15 = arith.constant 2.000000e-01 : f32
    %46 = vector.broadcast %cst_15 : f32 to vector<8x4xf32>
    %47 = arith.mulf %43, %46 : vector<8x4xf32>
    %cst_16 = arith.constant 2.000000e-01 : f32
    %48 = vector.broadcast %cst_16 : f32 to vector<8x4xf32>
    %49 = arith.mulf %45, %48 : vector<8x4xf32>
    %50 = arith.mulf %47, %47 : vector<8x4xf32>
    %51 = arith.subf %49, %50 : vector<8x4xf32>
    %52 = tpu.concatenate %47, %51 in 1 : vector<8x4xf32>, vector<8x4xf32> -> vector<8x8xf32>
    %c0_17 = arith.constant 0 : index
    %c0_18 = arith.constant 0 : index
    %53 = vector.load %arg6[%c0_17, %c0_18] : memref<8x8xf32, #tpu.memory_space<vmem>>, vector<8x8xf32>
    tpu.vector_store %arg6[%c0_17, %c0_18], %52 {strides = array<i32>} : memref<8x8xf32, #tpu.memory_space<vmem>>, vector<8x8xf32>,
    return
  }
  func.func @transform_0(%arg0: i32) -> (i32, i32) {
    %c0_i32 = arith.constant 0 : i32
    %c0_i32_0 = arith.constant 0 : i32
    %c0_i32_1 = arith.constant 0 : i32
    return %c0_i32, %c0_i32_0 : i32, i32
  }
  func.func @transform_1(%arg0: i32) -> (i32, i32) {
    %c0_i32 = arith.constant 0 : i32
    %c0_i32_0 = arith.constant 0 : i32
    %c0_i32_1 = arith.constant 0 : i32
    return %c0_i32, %c0_i32_0 : i32, i32
  }
  func.func @transform_2(%arg0: i32) -> (i32, i32) {
    %c0_i32 = arith.constant 0 : i32
    %c0_i32_0 = arith.constant 0 : i32
    %c0_i32_1 = arith.constant 0 : i32
    return %c0_i32, %c0_i32_0 : i32, i32
  }
  func.func @transform_3(%arg0: i32) -> (i32, i32) {
    %c0_i32 = arith.constant 0 : i32
    %c0_i32_0 = arith.constant 0 : i32
    %c0_i32_1 = arith.constant 0 : i32
    return %c0_i32, %c0_i32_0 : i32, i32
  }
  func.func @transform_4(%arg0: i32) -> (i32, i32) {
    %c0_i32 = arith.constant 0 : i32
    %c0_i32_0 = arith.constant 0 : i32
    %c0_i32_1 = arith.constant 0 : i32
    return %c0_i32, %c0_i32_0 : i32, i32
  }
  func.func @transform_5(%arg0: i32) -> (i32, i32) {
    %c0_i32 = arith.constant 0 : i32
    %c0_i32_0 = arith.constant 0 : i32
    %c0_i32_1 = arith.constant 0 : i32
    return %c0_i32, %c0_i32_0 : i32, i32
  }
}

</mosaic_0001>

<bundles_post_ra>
// kernel: tpu_custom_call.1
= control target key start
LH: loop header
LB: loop body
LE: loop exit
PB: predicated region body
PF: predicated region fallthrough
CT: control target
= control target key end

     0   :  { %v338_v4 = vmov 0.0   ;;  %vm38_vm0 = vcmask 130048   ;;  %s487_s0 = inlined_call_operand.vmem [shape: f32[8,16], index: 0, kind: input, shape index: {}]   ;;  %s488_s1 = inlined_call_operand.vmem [shape: f32[16,160], index: 1, kind: input, shape index: {}]   ;;  %s489_s2 = inlined_call_operand.vmem [shape: f32[1,160], index: 2, kind: input, shape index: {}]   ;;  %s490_s3 = inlined_call_operand.vmem [shape: f32[160,40], index: 3, kind: input, shape index: {}]   ;;  %s491_s4 = inlined_call_operand.vmem [shape: f32[1,40], index: 4, kind: input, shape index: {}]   ;;  %s492_s5 = inlined_call_operand.hbm [shape: f32[8,8], index: 5, kind: output, shape index: {}]  }
   0x1   :  { %v25_v0 = vld [vmem:[%s488_s1 + $0x18] sm:$0xff]  ;;  %v24_v1 = vld [vmem:[%s488_s1 + $0x10] sm:$0xff]  ;;  %v23_v2 = vld [vmem:[%s488_s1 + $0x8] sm:$0xff]  ;;  %106 = vmatprep.mubr.f32.mxu0 %v338_v4  ;;  %146 = vmatprep.subr.mxu1 %v338_v4 }
   0x2   :  { %70 = vmatprep.subr.mxu0 %v25_v0  ;;  %v22_v3 = vld [vmem:[%s488_s1] sm:$0xff]  ;;  %v130_v5 = vld [vmem:[%s490_s3 + $0x78] sm:$0xff]  ;;  %v129_v7 = vld [vmem:[%s490_s3 + $0x70] sm:$0xff] }
   0x3   :  { %71 = vmatpush1.msra.mxu0 %v24_v1  ;;  %v21_v6 = vld [vmem:[%s487_s0] sm:$0xff]  ;;  %147 = vmatpush1.msra.mxu1 %v130_v5  ;;  %v128_v8 = vld [vmem:[%s490_s3 + $0x68] sm:$0xff] }
   0x4   :  { %72 = vmatprep.subr.mxu0 %v23_v2  ;;  %148 = vmatprep.subr.mxu1 %v338_v4  ;;  %v127_v9 = vld [vmem:[%s490_s3 + $0x60] sm:$0xff] }
   0x5   :  { %73 = vmatpush1.msra.mxu0 %v22_v3  ;;  %149 = vmatpush1.msra.mxu1 %v129_v7 }
   0x6   :  { %302 = vmatmul.mubr.msk.f32.vlgmr.msra.gmra.mxu0 %vm38_vm0, %v21_v6  ;;  %150 = vmatprep.subr.mxu1 %v338_v4 }
   0x7   :  { %151 = vmatpush1.msra.mxu1 %v128_v8 }
   0x8   :  { %10 = vsyncpa [#allocation3], 0  ;;  %152 = vmatprep.subr.mxu1 %v338_v4  ;;  %v126_v10 = vld [vmem:[%s490_s3 + $0x58] sm:$0xff]  ;;  %v125_v11 = vld [vmem:[%s490_s3 + $0x50] sm:$0xff]  ;;  %v28_v26 = vlaneseq  ;;  %vm142_vm1 = vcmask 261120   ;;  %s340_s17 = smov 20  }
   0x9   :  { %153 = vmatpush1.msra.mxu1 %v127_v9  ;;  %v124_v12 = vld [vmem:[%s490_s3 + $0x48] sm:$0xff]  ;;  %v123_v13 = vld [vmem:[%s490_s3 + $0x40] sm:$0xff]  ;;  %v122_v14 = vld [vmem:[%s490_s3 + $0x38] sm:$0xff]  ;;  %s341_s18 = smov 116   ;;  %s342_s19 = smov 124   ;;  %vm284_vm4 = vcmask 31744  }
   0xa   :  { %154 = vmatprep.subr.mxu1 %v338_v4  ;;  %v121_v15 = vld [vmem:[%s490_s3 + $0x30] sm:$0xff]  ;;  %v120_v16 = vld [vmem:[%s490_s3 + $0x28] sm:$0xff]  ;;  %v119_v17 = vld [vmem:[%s490_s3 + $0x20] sm:$0xff]  ;;  %v29_v27 = vshrl.u32 %v28_v26, 7  ;;  %s343_s20 = smov 112   ;;  %vm286_vm5 = vcmask 64512  }
   0xb   :  { %155 = vmatpush1.msra.mxu1 %v126_v10  ;;  %v118_v18 = vld [vmem:[%s490_s3 + $0x18] sm:$0xff]  ;;  %v117_v19 = vld [vmem:[%s490_s3 + $0x10] sm:$0xff]  ;;  %v116_v20 = vld [vmem:[%s490_s3 + $0x8] sm:$0xff] }
   0xc   :  { %156 = vmatprep.subr.mxu1 %v338_v4  ;;  %v115_v21 = vld [vmem:[%s490_s3] sm:$0xff]  ;;  %v134_v22 = vld [vmem:[%s490_s3 + $0x98] sm:$0xff]  ;;  %v133_v23 = vld [vmem:[%s490_s3 + $0x90] sm:$0xff]  ;;  %v30_v28 = vsub.s32 0, %v29_v27  ;;  %v34_v30 = vsub.s32 1, %v29_v27 }
   0xd   :  { %157 = vmatpush1.msra.mxu1 %v125_v11  ;;  %v132_v24 = vld [vmem:[%s490_s3 + $0x88] sm:$0xff]  ;;  %v131_v25 = vld [vmem:[%s490_s3 + $0x80] sm:$0xff] }
   0xe   :  { %158 = vmatprep.subr.mxu1 %v338_v4  ;;  %v26_v29 = vld [vmem:[%s489_s2] sm:$0x3]  ;;  %s339_s2 = smov 120  }
   0xf   :  { %159 = vmatpush1.msra.mxu1 %v124_v12  ;;  %v31_v31 = vrot.slane %v26_v29, %v30_v28  ;;  %v35_v32 = vrot.slane %v26_v29, %v34_v30  ;;  %v303_v39 = vld [vmem:[%s491_s4] ss:$0 sm:$0xff]  ;;  %s344_s4 = smov [#allocation2]  }
  0x10   :  { %160 = vmatprep.subr.mxu1 %v338_v4  ;;  %s294_s21 = sshll.u32 %s344_s4, 4  ;;  %s295_s21 = int_to_ptr.vmem [resolvable:$true] %s294_s21 }
  0x11   :  { %161 = vmatpush1.msra.mxu1 %v123_v13  ;;  %s316_s22 = scalar_lea.vmem %s295_s21, 128  ;;  %p321_p1 = scmp.lt.s32.totalorder %s295_s21, %s295_s21 }
  0x12   :  { %162 = vmatprep.subr.mxu1 %v338_v4  ;;  %p317_p0 = scmp.ne.s32.totalorder %s295_s21, %s316_s22  ;;  %p322_p2 = scmp.lt.s32.totalorder %s316_s22, %s316_s22 }
  0x13   :  { %163 = vmatpush1.msra.mxu1 %v122_v14 }
  0x14   :  { %164 = vmatprep.subr.mxu1 %v338_v4  ;;  %p323_p3 = por %p322_p2, %p321_p1 }
  0x15   :  { %165 = vmatpush1.msra.mxu1 %v121_v15 }
  0x16   :  { %166 = vmatprep.subr.mxu1 %v338_v4  ;;  %p324_p4 = pnand %p323_p3, %p317_p0 }
  0x17   :  { %167 = vmatpush1.msra.mxu1 %v120_v16 }
  0x18   :  { %168 = vmatprep.subr.mxu1 %v338_v4 }
  0x19   :  { %169 = vmatpush1.msra.mxu1 %v119_v17 }
  0x1a   :  { %170 = vmatprep.subr.mxu1 %v338_v4 }
  0x1b   :  { %171 = vmatpush1.msra.mxu1 %v118_v18 }
  0x1c   :  { %172 = vmatprep.subr.mxu1 %v338_v4 }
  0x1d   :  { %173 = vmatpush1.msra.mxu1 %v117_v19 }
  0x1e   :  { %174 = vmatprep.subr.mxu1 %v338_v4 }
  0x1f   :  { %175 = vmatpush1.msra.mxu1 %v116_v20 }
  0x20   :  { %176 = vmatprep.subr.mxu1 %v338_v4 }
  0x21   :  { %177 = vmatpush1.msra.mxu1 %v115_v21 }
  0x22   :  { %202 = vmatprep.subr.mxu1 %v338_v4 }
  0x23   :  { %203 = vmatpush2.msra.mxu1 %v134_v22 }
  0x24   :  { %204 = vmatprep.subr.mxu1 %v338_v4 }
  0x25   :  { %205 = vmatpush2.msra.mxu1 %v133_v23 }
  0x26   :  { %206 = vmatprep.subr.mxu1 %v338_v4 }
  0x27   :  { %207 = vmatpush2.msra.mxu1 %v132_v24 }
  0x28   :  { %208 = vmatprep.subr.mxu1 %v338_v4 }
  0x29   :  { %209 = vmatpush2.msra.mxu1 %v131_v25 }
  0xc6   :  { %v108_v33 = vpop.f32.mrf.mxu0 }
  0xc7   :  { %v109_v34 = vadd.f32 %v108_v33, %v31_v31 }
  0xc8   :  { %v110_v35 = vpop.f32.mrf.mxu0 }
  0xc9   :  { %v111_v36 = vadd.f32 %v110_v35, %v35_v32  ;;  %v113_v38 = vmax.f32 %v109_v34, 0.0 }
  0xcb   :  { %v114_v37 = vmax.f32 %v111_v36, 0.0 }
  0xcd   :  { %304 = vmatprep.mubr.msk.f32.mxu1 %vm142_vm1, %v114_v37 }
  0xce   :  { %211 = vmatmul.mubr.f32.vlgmr.msra.gmra.mxu1 %v113_v38 }
 0x18e   :  { %v212_v40 = vpop.f32.mrf.mxu1 }
 0x18f   :  { %v213_v41 = vadd.f32 %v303_v39, %v212_v40 }
 0x190   :  { %v214_v42 = vpop.f32.mrf.mxu1 }
 0x191   :  { %248 = vrot.lane.b32.xlu1 %v213_v41, %s339_s2  ;;  %v230_v43 = vmul.f32 %v213_v41, %v213_v41  ;;  %v217_v44 = vmul.f32 1.442695, %v213_v41  ;;  %vm216_vm3 = vcmp.gt.f32.partialorder %v213_v41, 20.0 }
 0x193   :  { %232 = vrot.lane.b32.xlu0 %v230_v43, %s340_s17  ;;  %312 = vpow2.f32 %v217_v44 }
 0x195   :  { %256 = vrot.lane.b32.xlu1 %v213_v41, %s341_s18 }
 0x197   :  { %239 = vrot.lane.b32.xlu0 %v213_v41, %s342_s19 }
 0x19b   :  { %264 = vrot.lane.b32.xlu0 %v213_v41, %s343_s20 }
 0x1a0   :  { %v313_v45 = vpop.eup %312 }
 0x1a1   :  { %v219_v46 = vadd.f32 1.0, %v313_v45  ;;  %v222_v47 = vmul.f32 -0.5, %v313_v45  ;;  %v225_v50 = vand.u32 2147483647, %v313_v45 }
 0x1a3   :  { %314 = vlog2.f32 %v219_v46  ;;  %v223_v49 = vadd.f32 1.0, %v222_v47  ;;  %vm226_vm2 = vcmp.lt.f32.partialorder %v225_v50, 0.0004427343 }
 0x1a5   :  { %v224_v52 = vmul.f32 %v313_v45, %v223_v49 }
 0x1b0   :  { %v315_v48 = vpop.eup %314 }
 0x1b1   :  { %v221_v51 = vmul.f32 0.6931472, %v315_v48 }
 0x1b3   :  { %v227_v53 = vsel %vm226_vm2, %v224_v52, %v221_v51 }
 0x1b4   :  { %v228_v54 = vsel %vm216_vm3, %v213_v41, %v227_v53 }
 0x1b5   :  { %v229_v55 = vadd.f32 1e-06, %v228_v54 }
 0x203   :  { %v249_v58 = vpop.permute.xlu1 %248 }
 0x205   :  { %v233_v56 = vpop.permute.xlu0 %232 }
 0x206   :  { %v235_v57 = vadd.f32 %v233_v56, %v229_v55 }
 0x207   :  { %v257_v62 = vpop.permute.xlu1 %256 }
 0x208   :  { %252 = vrot.lane.b32.xlu0 %v235_v57, %s339_s2  ;;  %244 = vrot.lane.b32.xlu1 %v235_v57, %s342_s19 }
 0x209   :  { %v240_v59 = vpop.permute.xlu0 %239 }
 0x20a   :  { %v242_v60 = vadd.f32 %v240_v59, %v213_v41 }
 0x20c   :  { %v251_v61 = vadd.f32 %v249_v58, %v242_v60  ;;  %268 = vrot.lane.b32.xlu0 %v235_v57, %s343_s20  ;;  %260 = vrot.lane.b32.xlu1 %v235_v57, %s341_s18 }
 0x20d   :  { %v265_v0 = vpop.permute.xlu0 %264 }
 0x20e   :  { %v259_v63 = vadd.f32 %v257_v62, %v251_v61 }
 0x210   :  { %v267_v1 = vadd.f32 %v265_v0, %v259_v63 }
 0x212   :  { %v272_v2 = vmul.f32 0.2, %v267_v1 }
 0x214   :  { %v274_v3 = vmul.f32 %v272_v2, %v272_v2 }
 0x216   :  { %276 = vrot.lane.b32.xlu1 %v274_v3, %s340_s17 }
 0x27a   :  { %v245_v4 = vpop.permute.xlu1 %244  ;;  %v253_v6 = vpop.permute.xlu0 %252 }
 0x27b   :  { %v247_v5 = vadd.f32 %v245_v4, %v235_v57 }
 0x27d   :  { %v255_v7 = vadd.f32 %v253_v6, %v247_v5 }
 0x27e   :  { %v261_v8 = vpop.permute.xlu1 %260  ;;  %v269_v10 = vpop.permute.xlu0 %268 }
 0x27f   :  { %v263_v9 = vadd.f32 %v261_v8, %v255_v7 }
 0x281   :  { %v271_v11 = vadd.f32 %v269_v10, %v263_v9 }
 0x283   :  { %v273_v12 = vmul.f32 0.2, %v271_v11 }
 0x288   :  { %v277_v13 = vpop.permute.xlu1 %276 }
 0x289   :  { %v279_v14 = vsub.f32 %v273_v12, %v277_v13 }
 0x28b   :  { %281 = vrot.lane.b32.xlu0 %v279_v14, %s343_s20 }
 0x2fd   :  { %v282_v15 = vpop.permute.xlu0 %281 }
 0x2fe   :  { %v285_v16 = vsel %vm284_vm4, %v272_v2, %v282_v15 }
 0x2ff   :  { %287 = vst.msk [vmem:[#allocation2] sm:$0xff] %vm286_vm5, %v285_v16 }
 0x300   :  { %327 = shalt.err (!%p324_p4)
}
 0x301   :  { %297 = dma.vmem_to_hbm [thread:$0]  %s295_s21, 128, %s492_s5, [#allocation3]  }
 0x302   :  { %336 = dma.done.wait [#allocation3], 128  }
 0x303   :  { %337 = vsyncadd [#allocation3], 4294967168 }
 0x304   :  { %301 = vsyncpa [#allocation3], 1 }

</bundles_post_ra>
